<compile_context>
chip_gen: v5e
topology: v5e:2x2
jax: 0.10.0
libtpu: 0.0.40
codegen_flags: <defaults>
</compile_context>

<pallas_src>
import jax
import jax.numpy as jnp
from jax.experimental import pallas as pl
from jax.experimental.pallas import tpu as pltpu


def linear_kernel(x_ref, w_ref, b_ref, o_ref):
    """One batch tile: (TB, F) x-rows -> (1, TB) lane-dense outputs."""
    x = x_ref[...]                       # (TB, F)  VMEM, streamed per grid step
    w = w_ref[...]                       # (1, F)   VMEM, resident across the grid
    b = b_ref[0]                         # scalar   SMEM
    # VPU multiply + XLU cross-lane reduce; no MXU involvement (N=1 matvec).
    s = jnp.sum(x * w, axis=-1) + b      # (TB,)
    # Lane-dense store: output block is (1, TB) -> unmasked full-lane vst.
    o_ref[...] = s[None, :].astype(o_ref.dtype)


def _vmem_limit_bytes():
    """Generation-aware scoped-VMEM budget (half of physical, clamped)."""
    cap = 64 << 20
    try:
        info = pltpu.get_tpu_info()
        cap = int(getattr(info, "vmem_capacity_bytes", cap))
    except Exception:
        pass
    # v5e/v6e (128 MiB) -> 64 MiB limit; v7x (64 MiB) -> 32 MiB limit.
    return max(16 << 20, min(96 << 20, cap // 2))


def _pick_batch_tile(batch, in_features, *, per_buffer_budget_bytes, max_tile=32768):
    """Batch tile sized so each double-buffered (TB, F) f32 x window is a few MiB
    (amortizes the ~0.35 us/grid-step overhead) while fitting the VMEM budget."""
    tb = per_buffer_budget_bytes // max(4 * in_features, 1)
    tb = (tb // 128) * 128               # multiple of 128: lane-dense out + aligned x block
    tb = max(128, min(int(tb), max_tile))
    if batch >= 256:
        # Guarantee >= 2 grid steps so "parallel" can shard across both v7x TensorCores.
        tb = min(tb, max(128, ((batch // 2) // 128) * 128))
    # Never allocate a window bigger than the (128-rounded-up) batch.
    tb = min(tb, max(128, pl.cdiv(batch, 128) * 128))
    return int(tb)


def logistic_regression_exp(x, weight, bias, *, block_batch=None):
    """Forward pass of LogisticRegressionExp (nn.Linear(in_features, 1)).

    Args:
      x:      (batch, in_features) float32
      weight: (1, in_features)     float32 (PyTorch nn.Linear layout, used as-is)
      bias:   (1,)                 float32
      block_batch: optional batch-tile override (rounded to a multiple of 128).
    Returns:
      (batch, 1) float32
    """
    B, F = x.shape
    x = x.astype(jnp.float32)
    w = weight.reshape(1, F).astype(jnp.float32)
    b = bias.reshape(1).astype(jnp.float32)

    vmem_limit = _vmem_limit_bytes()
    if block_batch is not None:
        tb = max(128, (int(block_batch) // 128) * 128)
    else:
        tb = _pick_batch_tile(B, F, per_buffer_budget_bytes=vmem_limit // 4)

    grid = pl.cdiv(B, tb)  # no padding: Pallas handles the partial last block,
                           # OOB output lanes are masked / discarded below.

    cost = pl.CostEstimate(
        flops=2 * B * F,
        transcendentals=0,
        bytes_accessed=4 * B * F + 4 * F + 4 * B,
    )

    out_row = pl.pallas_call(
        linear_kernel,
        out_shape=jax.ShapeDtypeStruct((1, B), jnp.float32),
        grid=(grid,),
        in_specs=[
            pl.BlockSpec((tb, F), lambda i: (i, 0)),            # x: streamed per batch tile
            pl.BlockSpec((1, F), lambda i: (0, 0)),             # weight: resident in VMEM
            pl.BlockSpec(memory_space=pltpu.MemorySpace.SMEM),  # bias: SMEM scalar
        ],
        out_specs=pl.BlockSpec((1, tb), lambda i: (0, i)),      # lane-dense output row
        compiler_params=pltpu.CompilerParams(
            dimension_semantics=("parallel",),                  # shard grid across TCs (v7x)
            vmem_limit_bytes=vmem_limit,
        ),
        cost_estimate=cost,
    )(x, w, b)

    return out_row[0, :].reshape(B, 1)


def _reference(x, weight, bias):
    return x @ weight.T + bias


if __name__ == "__main__":
    key = jax.random.PRNGKey(0)
    k_x1, k_x2, k_w, k_b = jax.random.split(key, 4)

    in_features = 32
    bound = 1.0 / (in_features ** 0.5)   # mimic nn.Linear's U(-1/sqrt(F), 1/sqrt(F)) init
    weight = jax.random.uniform(k_w, (1, in_features), jnp.float32, -bound, bound)
    bias = jax.random.uniform(k_b, (1,), jnp.float32, -bound, bound)

    # Case 1: tiny batch -> single (partial) block, grid of 1.
    x_small = jax.random.normal(k_x1, (8, in_features), jnp.float32)
    out_small = jax.block_until_ready(logistic_regression_exp(x_small, weight, bias))
    assert out_small.shape == (8, 1)
    assert jnp.allclose(out_small, _reference(x_small, weight, bias), atol=1e-5, rtol=1e-5)

    # Case 2: ragged batch with forced small tile -> 2 grid steps, partial last block,
    # NO wrapper-side padding (OOB rows' outputs are masked / never read back).
    x_big = jax.random.normal(k_x2, (200, in_features), jnp.float32)
    out_big = jax.block_until_ready(
        logistic_regression_exp(x_big, weight, bias, block_batch=128))
    assert out_big.shape == (200, 1)
    assert jnp.allclose(out_big, _reference(x_big, weight, bias), atol=1e-5, rtol=1e-5)

    # Case 3: default (auto) tile selection on the same ragged batch.
    out_auto = jax.block_until_ready(logistic_regression_exp(x_big, weight, bias))
    assert out_auto.shape == (200, 1)
    assert jnp.allclose(out_auto, _reference(x_big, weight, bias), atol=1e-5, rtol=1e-5)

    print("KERNEL_OK")
</pallas_src>

<mosaic_0001>
module attributes {stable_mosaic.version = 11 : i64} {
  func.func @linear_kernel(%arg0: i32, %arg1: memref<128x32xf32, #tpu.memory_space<vmem>>, %arg2: memref<1x32xf32, #tpu.memory_space<vmem>>, %arg3: memref<1xf32, #tpu.memory_space<smem>>, %arg4: memref<1x128xf32, #tpu.memory_space<vmem>>) attributes {dimension_semantics = [#tpu.dimension_semantics<parallel>], iteration_bounds = array<i64: 1>, scalar_prefetch = 0 : i64, scratch_operands = 0 : i64, tpu.core_type = #tpu.core_type<tc>, window_params = [{transform_indices = @transform_0, window_bounds = array<i64: 128, 32>}, {pipeline_mode = #tpu.pipeline_mode<synchronous>, transform_indices = @transform_1, window_bounds = array<i64: 1, 32>}, {transform_indices = @transform_2, window_bounds = array<i64: 1>}, {transform_indices = @transform_3, window_bounds = array<i64: 1, 128>}]} {
    %c0 = arith.constant 0 : index
    %c0_0 = arith.constant 0 : index
    %0 = vector.load %arg1[%c0, %c0_0] : memref<128x32xf32, #tpu.memory_space<vmem>>, vector<128x32xf32>
    %c0_1 = arith.constant 0 : index
    %c0_2 = arith.constant 0 : index
    %1 = vector.load %arg2[%c0_1, %c0_2] : memref<1x32xf32, #tpu.memory_space<vmem>>, vector<1x32xf32>
    %c0_3 = arith.constant 0 : index
    %2 = memref.load %arg3[%c0_3] : memref<1xf32, #tpu.memory_space<smem>>
    %3 = vector.broadcast %1 : vector<1x32xf32> to vector<128x32xf32>
    %4 = arith.mulf %0, %3 : vector<128x32xf32>
    %cst = arith.constant dense<0.000000e+00> : vector<128xf32>
    %5 = vector.multi_reduction <add>, %4, %cst [1] : vector<128x32xf32> to vector<128xf32>
    %6 = vector.broadcast %2 : f32 to vector<128xf32>
    %7 = arith.addf %5, %6 : vector<128xf32>
    %8 = vector.shape_cast %7 : vector<128xf32> to vector<1x128xf32>
    %c0_4 = arith.constant 0 : index
    %c0_5 = arith.constant 0 : index
    %9 = vector.load %arg4[%c0_4, %c0_5] : memref<1x128xf32, #tpu.memory_space<vmem>>, vector<1x128xf32>
    tpu.vector_store %arg4[%c0_4, %c0_5], %8 {strides = array<i32>} : memref<1x128xf32, #tpu.memory_space<vmem>>, vector<1x128xf32>,
    return
  }
  func.func @transform_0(%arg0: i32) -> (i32, i32) {
    %c0_i32 = arith.constant 0 : i32
    %c0_i32_0 = arith.constant 0 : i32
    return %arg0, %c0_i32 : i32, i32
  }
  func.func @transform_1(%arg0: i32) -> (i32, i32) {
    %c0_i32 = arith.constant 0 : i32
    %c0_i32_0 = arith.constant 0 : i32
    %c0_i32_1 = arith.constant 0 : i32
    return %c0_i32, %c0_i32_0 : i32, i32
  }
  func.func @transform_2(%arg0: i32) -> i32 {
    %c0_i32 = arith.constant 0 : i32
    %c0_i32_0 = arith.constant 0 : i32
    return %c0_i32 : i32
  }
  func.func @transform_3(%arg0: i32) -> (i32, i32) {
    %c0_i32 = arith.constant 0 : i32
    %c0_i32_0 = arith.constant 0 : i32
    return %c0_i32, %arg0 : i32, i32
  }
}

</mosaic_0001>

<bundles_post_ra>
// kernel: tpu_custom_call.1
= control target key start
LH: loop header
LB: loop body
LE: loop exit
PB: predicated region body
PF: predicated region fallthrough
CT: control target
= control target key end

     0   :  { %9 = vsyncpa [#allocation4], 0  ;;  %s378_s0 = inlined_call_operand.hbm [shape: f32[8,32], index: 0, kind: input, shape index: {}]   ;;  %s379_s1 = inlined_call_operand.vmem [shape: f32[1,32], index: 1, kind: input, shape index: {}]   ;;  %s380_s2 = inlined_call_operand.<no memory space> [shape: f32[1], index: 2, kind: input, shape index: {}]   ;;  %s381_s3 = inlined_call_operand.hbm [shape: f32[1,8], index: 3, kind: output, shape index: {}]  }
   0x1   :  { %10 = vsyncpa [#allocation5], 0 }
   0x2   :  { %14 = vsyncadd [#allocation4], 1920  ;;  %s15_s14 = sshll.u32 %s378_s0, 4  ;;  %s290_s15 = smov [#allocation3]   ;;  %s16_s14 = int_to_ptr.hbm [resolvable:$true] %s15_s14 }
   0x3   :  { %s17_s16 = sshll.u32 %s290_s15, 4  ;;  %s291_s17 = smov 128   ;;  %s18_s16 = int_to_ptr.vmem [resolvable:$true] %s17_s16 }
   0x4   :  { %s292_s18 = smov 8  }
   0x5   :  { %23 = dma.hbm_to_vmem [thread:$0]  %s16_s14, 128, %s18_s16, [#allocation4], %s291_s17, %s291_s17, %s292_s18  }
   0x6   :  { %286 = dma.done.wait [#allocation4], 2048  }
   0x7   :  { %287 = vsyncadd [#allocation4], 4294965248  ;;  %v32_v0 = vld [vmem:[#allocation3] sm:$0xff]  ;;  %vm69_vm0 = vcmask 261120   ;;  %v34_v2 = vld [vmem:[#allocation3 + $0x10] sm:$0xff]  ;;  %v151_v51 = vlaneseq  ;;  %v339_v53 = vstv %s380_s2  ;;  %vm156_vm1 = vcmask 130112  }
   0x8   :  { %v237_v1 = vld [vmem:[%s379_s1] ss:$0 sm:$0xff]  ;;  %v33_v7 = vld [vmem:[#allocation3 + $0x8] sm:$0xff]  ;;  %v35_v8 = vld [vmem:[#allocation3 + $0x18] sm:$0xff]  ;;  %vm160_vm2 = vcmask 195712   ;;  %vm164_vm3 = vcmask 261312  }
   0x9   :  { %v36_v3 = vld [vmem:[#allocation3 + $0x20] sm:$0xff]  ;;  %v53_v4 = vmul.f32 %v237_v1, %v32_v0  ;;  %v55_v5 = vmul.f32 %v237_v1, %v34_v2  ;;  %v37_v12 = vld [vmem:[#allocation3 + $0x28] sm:$0xff]  ;;  %v54_v13 = vmul.f32 %v237_v1, %v33_v7  ;;  %v56_v14 = vmul.f32 %v237_v1, %v35_v8  ;;  %v38_v19 = vld [vmem:[#allocation3 + $0x30] sm:$0xff]  ;;  %s293_s2 = smov [#allocation6]   ;;  %s223_s24 = sshll.u32 %s381_s3, 4  ;;  %s224_s24 = int_to_ptr.hbm [resolvable:$true] %s223_s24 }
   0xa   :  { %v57_v6 = vmul.f32 %v237_v1, %v36_v3  ;;  %v58_v15 = vmul.f32 %v237_v1, %v37_v12  ;;  %v39_v20 = vld [vmem:[#allocation3 + $0x38] sm:$0xff]  ;;  %v40_v21 = vld [vmem:[#allocation3 + $0x40] sm:$0xff]  ;;  %v59_v22 = vmul.f32 %v237_v1, %v38_v19  ;;  %v41_v28 = vld [vmem:[#allocation3 + $0x48] sm:$0xff]  ;;  %v341_v54 = vand.u32 127, %v151_v51  ;;  %s221_s21 = sshll.u32 %s293_s2, 4  ;;  %s222_s21 = int_to_ptr.vmem [resolvable:$true] %s221_s21 }
   0xb   :  { %v70_v9 = vsel %vm69_vm0, %v53_v4, 0.0  ;;  %v76_v10 = vsel %vm69_vm0, %v55_v5, 0.0  ;;  %v73_v16 = vsel %vm69_vm0, %v54_v13, 0.0  ;;  %v79_v17 = vsel %vm69_vm0, %v56_v14, 0.0  ;;  %v42_v29 = vld [vmem:[#allocation3 + $0x50] sm:$0xff]  ;;  %v43_v30 = vld [vmem:[#allocation3 + $0x58] sm:$0xff] }
   0xc   :  { %v82_v11 = vsel %vm69_vm0, %v57_v6, 0.0  ;;  %71 = vadd.xlane.f32.xlu0 %v70_v9  ;;  %77 = vadd.xlane.f32.xlu1 %v76_v10  ;;  %v85_v18 = vsel %vm69_vm0, %v58_v15, 0.0  ;;  %v60_v23 = vmul.f32 %v237_v1, %v39_v20  ;;  %v61_v24 = vmul.f32 %v237_v1, %v40_v21  ;;  %v44_v37 = vld [vmem:[#allocation3 + $0x60] sm:$0xff]  ;;  %v45_v38 = vld [vmem:[#allocation3 + $0x68] sm:$0xff]  ;;  %v46_v39 = vld [vmem:[#allocation3 + $0x70] sm:$0xff] }
   0xd   :  { %83 = vadd.xlane.f32.xlu2 %v82_v11  ;;  %v88_v25 = vsel %vm69_vm0, %v59_v22, 0.0  ;;  %v62_v31 = vmul.f32 %v237_v1, %v41_v28  ;;  %v63_v32 = vmul.f32 %v237_v1, %v42_v29  ;;  %v64_v33 = vmul.f32 %v237_v1, %v43_v30  ;;  %v47_v46 = vld [vmem:[#allocation3 + $0x78] sm:$0xff] }
   0xe   :  { %v91_v26 = vsel %vm69_vm0, %v60_v23, 0.0  ;;  %v94_v27 = vsel %vm69_vm0, %v61_v24, 0.0  ;;  %v65_v40 = vmul.f32 %v237_v1, %v44_v37  ;;  %v66_v41 = vmul.f32 %v237_v1, %v45_v38 }
   0xf   :  { %v97_v34 = vsel %vm69_vm0, %v62_v31, 0.0  ;;  %v100_v35 = vsel %vm69_vm0, %v63_v32, 0.0  ;;  %v103_v36 = vsel %vm69_vm0, %v64_v33, 0.0  ;;  %v67_v42 = vmul.f32 %v237_v1, %v46_v39 }
  0x10   :  { %v106_v43 = vsel %vm69_vm0, %v65_v40, 0.0  ;;  %v109_v44 = vsel %vm69_vm0, %v66_v41, 0.0  ;;  %v68_v47 = vmul.f32 %v237_v1, %v47_v46  ;;  %v154_v56 = vadd.s32 4294967288, %v341_v54 }
  0x11   :  { %v112_v45 = vsel %vm69_vm0, %v67_v42, 0.0  ;;  %v158_v57 = vadd.s32 4294967280, %v341_v54  ;;  %v162_v62 = vadd.s32 4294967272, %v341_v54  ;;  %v166_v6 = vadd.s32 4294967264, %v341_v54 }
  0x12   :  { %v115_v48 = vsel %vm69_vm0, %v68_v47, 0.0  ;;  %v170_v9 = vadd.s32 4294967256, %v341_v54  ;;  %v174_v11 = vadd.s32 4294967248, %v341_v54  ;;  %vm168_vm4 = vcmask 326912  }
  0x13   :  { %v178_v19 = vadd.s32 4294967240, %v341_v54  ;;  %vm172_vm5 = vcmask 392512   ;;  %vm176_vm6 = vcmask 458112   ;;  %v182_v23 = vadd.s32 4294967232, %v341_v54 }
  0x14   :  { %74 = vadd.xlane.f32.xlu0 %v73_v16  ;;  %80 = vadd.xlane.f32.xlu1 %v79_v17  ;;  %vm180_vm7 = vcmask 523712   ;;  %vm184_vm8 = vcmask 589312   ;;  %vm188_vm9 = vcmask 654912   ;;  %v194_v38 = vadd.s32 4294967208, %v341_v54 }
  0x15   :  { %86 = vadd.xlane.f32.xlu2 %v85_v18  ;;  %vm192_vm10 = vcmask 720512   ;;  %vm196_vm11 = vcmask 786112   ;;  %vm200_vm12 = vcmask 851712   ;;  %vm204_vm13 = vcmask 917312  }
  0x16   :  { %vm208_vm14 = vcmask 982912   ;;  %vm212_vm15 = vcmask 1048512  }
  0x1c   :  { %89 = vadd.xlane.f32.xlu0 %v88_v25  ;;  %92 = vadd.xlane.f32.xlu1 %v91_v26 }
  0x1d   :  { %95 = vadd.xlane.f32.xlu2 %v94_v27  ;;  %v186_v27 = vadd.s32 4294967224, %v341_v54 }
  0x24   :  { %98 = vadd.xlane.f32.xlu0 %v97_v34  ;;  %101 = vadd.xlane.f32.xlu1 %v100_v35  ;;  %v190_v34 = vadd.s32 4294967216, %v341_v54 }
  0x25   :  { %104 = vadd.xlane.f32.xlu2 %v103_v36 }
  0x2c   :  { %107 = vadd.xlane.f32.xlu0 %v106_v43  ;;  %110 = vadd.xlane.f32.xlu1 %v109_v44  ;;  %v198_v43 = vadd.s32 4294967200, %v341_v54 }
  0x2d   :  { %113 = vadd.xlane.f32.xlu2 %v112_v45 }
  0x34   :  { %116 = vadd.xlane.f32.xlu0 %v115_v48  ;;  %v202_v48 = vadd.s32 4294967192, %v341_v54 }
  0x7f   :  { %v72_v49 = vpop.xlane.xlu0 %71  ;;  %v78_v50 = vpop.xlane.xlu1 %77 }
  0x80   :  { %v84_v52 = vpop.xlane.xlu2 %83  ;;  %v119_v55 = vadd.f32 %v339_v53, %v72_v49  ;;  %v121_v58 = vadd.f32 %v339_v53, %v78_v50 }
  0x81   :  { %v123_v7 = vadd.f32 %v339_v53, %v84_v52 }
  0x82   :  { %v153_v1 = vperm.slane %v119_v55, %v341_v54  ;;  %v159_v3 = vperm.slane %v121_v58, %v158_v57  ;;  %v206_v55 = vadd.s32 4294967184, %v341_v54 }
  0x83   :  { %v167_v17 = vperm.slane %v123_v7, %v166_v6 }
  0x87   :  { %v75_v59 = vpop.xlane.xlu0 %74  ;;  %v81_v60 = vpop.xlane.xlu1 %80 }
  0x88   :  { %v120_v61 = vadd.f32 %v339_v53, %v75_v59  ;;  %v122_v63 = vadd.f32 %v339_v53, %v81_v60  ;;  %v87_v0 = vpop.xlane.xlu2 %86  ;;  %v210_v60 = vadd.s32 4294967176, %v341_v54 }
  0x89   :  { %v124_v10 = vadd.f32 %v339_v53, %v87_v0 }
  0x8a   :  { %v155_v2 = vperm.slane %v120_v61, %v154_v56  ;;  %v163_v5 = vperm.slane %v122_v63, %v162_v62 }
  0x8b   :  { %v171_v18 = vperm.slane %v124_v10, %v170_v9 }
  0x8c   :  { %v157_v4 = vsel %vm156_vm1, %v155_v2, %v153_v1 }
  0x8d   :  { %v161_v8 = vsel %vm160_vm2, %v159_v3, %v157_v4 }
  0x8e   :  { %v165_v14 = vsel %vm164_vm3, %v163_v5, %v161_v8 }
  0x8f   :  { %v90_v12 = vpop.xlane.xlu0 %89  ;;  %v93_v13 = vpop.xlane.xlu1 %92  ;;  %v169_v21 = vsel %vm168_vm4, %v167_v17, %v165_v14 }
  0x90   :  { %v125_v15 = vadd.f32 %v339_v53, %v90_v12  ;;  %v96_v16 = vpop.xlane.xlu2 %95  ;;  %v126_v20 = vadd.f32 %v339_v53, %v93_v13  ;;  %v173_v25 = vsel %vm172_vm5, %v171_v18, %v169_v21 }
  0x91   :  { %v127_v24 = vadd.f32 %v339_v53, %v96_v16 }
  0x92   :  { %v175_v22 = vperm.slane %v125_v15, %v174_v11  ;;  %v179_v26 = vperm.slane %v126_v20, %v178_v19 }
  0x93   :  { %v183_v33 = vperm.slane %v127_v24, %v182_v23 }
  0x94   :  { %v177_v28 = vsel %vm176_vm6, %v175_v22, %v173_v25 }
  0x95   :  { %v181_v36 = vsel %vm180_vm7, %v179_v26, %v177_v28 }
  0x96   :  { %v185_v40 = vsel %vm184_vm8, %v183_v33, %v181_v36 }
  0x97   :  { %v99_v29 = vpop.xlane.xlu0 %98  ;;  %v102_v30 = vpop.xlane.xlu1 %101 }
  0x98   :  { %v128_v31 = vadd.f32 %v339_v53, %v99_v29  ;;  %v105_v32 = vpop.xlane.xlu2 %104  ;;  %v129_v35 = vadd.f32 %v339_v53, %v102_v30 }
  0x99   :  { %v130_v39 = vadd.f32 %v339_v53, %v105_v32 }
  0x9a   :  { %v187_v37 = vperm.slane %v128_v31, %v186_v27  ;;  %v191_v41 = vperm.slane %v129_v35, %v190_v34 }
  0x9b   :  { %v195_v46 = vperm.slane %v130_v39, %v194_v38 }
  0x9c   :  { %v189_v42 = vsel %vm188_vm9, %v187_v37, %v185_v40 }
  0x9d   :  { %v193_v51 = vsel %vm192_vm10, %v191_v41, %v189_v42 }
  0x9e   :  { %v197_v57 = vsel %vm196_vm11, %v195_v46, %v193_v51 }
  0x9f   :  { %v108_v44 = vpop.xlane.xlu0 %107  ;;  %v111_v45 = vpop.xlane.xlu1 %110 }
  0xa0   :  { %v131_v47 = vadd.f32 %v339_v53, %v108_v44  ;;  %v132_v49 = vadd.f32 %v339_v53, %v111_v45  ;;  %v114_v50 = vpop.xlane.xlu2 %113 }
  0xa1   :  { %v133_v56 = vadd.f32 %v339_v53, %v114_v50 }
  0xa2   :  { %v199_v52 = vperm.slane %v131_v47, %v198_v43  ;;  %v203_v58 = vperm.slane %v132_v49, %v202_v48 }
  0xa3   :  { %v207_v61 = vperm.slane %v133_v56, %v206_v55 }
  0xa4   :  { %v201_v59 = vsel %vm200_vm12, %v199_v52, %v197_v57 }
  0xa5   :  { %v205_v63 = vsel %vm204_vm13, %v203_v58, %v201_v59 }
  0xa6   :  { %v209_v2 = vsel %vm208_vm14, %v207_v61, %v205_v63 }
  0xa7   :  { %v117_v62 = vpop.xlane.xlu0 %116 }
  0xa8   :  { %v134_v0 = vadd.f32 %v339_v53, %v117_v62 }
  0xaa   :  { %v211_v1 = vperm.slane %v134_v0, %v210_v60 }
  0xac   :  { %v213_v3 = vsel %vm212_vm15, %v211_v1, %v209_v2 }
  0xad   :  { %215 = vst [vmem:[#allocation6] sm:$0x1] %v213_v3 }
  0xae   :  { %226 = dma.vmem_to_hbm [thread:$0]  %s222_s21, 16, %s224_s24, [#allocation5]  }
  0xaf   :  { %288 = dma.done.wait [#allocation5], 16  }
  0xb0   :  { %289 = vsyncadd [#allocation5], 4294967280 }
  0xb1   :  { %231 = vsyncpa [#allocation4], 1 }
  0xb2   :  { %232 = vsyncpa [#allocation5], 1 }

</bundles_post_ra>
